<compile_context>
chip_gen: v7x
topology: tpu7x:2x2x1
jax: 0.10.0
libtpu: 0.0.40
codegen_flags: <defaults>
</compile_context>

<pallas_src>
import jax
import jax.numpy as jnp
from jax.experimental import pallas as pl
from jax.experimental.pallas import tpu as pltpu

PAD = 128          # lane-aligned padded width for hidden / output feature dims
TILE_B_MAX = 1024  # rows per grid step (multiple of 8 for f32 sublanes)


def _round_up(n, m):
    return (n + m - 1) // m * m


def mlp_kernel(x_ref, w0_ref, b0_ref, w1_ref, b1_ref, w2_ref, b2_ref, o_ref):
    # x: (tile_b, 64) f32 ; weights: bf16 (K, 128) ; biases: f32 (1, 128)
    # bf16 inputs to the MXU with f32 accumulation; bias add + tanh stay in f32.
    x = x_ref[...].astype(jnp.bfloat16)
    v1 = jnp.tanh(
        jnp.dot(x, w0_ref[...], preferred_element_type=jnp.float32) + b0_ref[...]
    )
    v2 = jnp.tanh(
        jnp.dot(v1.astype(jnp.bfloat16), w1_ref[...],
                preferred_element_type=jnp.float32) + b1_ref[...]
    )
    v3 = jnp.tanh(
        jnp.dot(v2.astype(jnp.bfloat16), w2_ref[...],
                preferred_element_type=jnp.float32) + b2_ref[...]
    )
    o_ref[...] = v3.astype(o_ref.dtype)


def pad_params(params):
    """Zero-pad feature dims to 128 (exact: padded lanes contribute 0) and cast
    the weight matrices to bf16 for the MXU."""
    def pad_to(a, shape):
        return jnp.pad(a, [(0, s - d) for d, s in zip(a.shape, shape)])

    w0 = pad_to(params["w0"], (64, PAD)).astype(jnp.bfloat16)
    w1 = pad_to(params["w1"], (PAD, PAD)).astype(jnp.bfloat16)
    w2 = pad_to(params["w2"], (PAD, PAD)).astype(jnp.bfloat16)
    b0 = pad_to(params["b0"], (1, PAD))
    b1 = pad_to(params["b1"], (1, PAD))
    b2 = pad_to(params["b2"], (1, PAD))
    return w0, b0, w1, b1, w2, b2


def mlp_forward(x, params, *, tile_b=None):
    """x: [B, 64] f32; params: dict of f32 weights (in,out) and biases (1,out).

    Note: at B == 1 a plain-XLA path would be faster (the Pallas call is pure
    launch/DMA overhead at that size); the kernel path pays off at large batch.
    """
    B, f_in = x.shape
    assert f_in == 64, f_in
    out_dim = params["w2"].shape[1]  # 64

    if tile_b is None:
        tile_b = min(TILE_B_MAX, _round_up(B, 8))
    tile_b = _round_up(tile_b, 8)

    # Pad the batch so B_pad % tile_b == 0; padded rows are sliced off below.
    b_pad = _round_up(B, tile_b)
    if b_pad != B:
        x = jnp.pad(x, ((0, b_pad - B), (0, 0)))

    w0, b0, w1, b1, w2, b2 = pad_params(params)

    const2 = lambda i: (0, 0)  # weights/biases stay VMEM-resident (one block)
    out_padded = pl.pallas_call(
        mlp_kernel,
        out_shape=jax.ShapeDtypeStruct((b_pad, PAD), jnp.float32),
        grid=(b_pad // tile_b,),
        in_specs=[
            pl.BlockSpec((tile_b, 64), lambda i: (i, 0)),   # x tile
            pl.BlockSpec((64, PAD), const2),                # w0
            pl.BlockSpec((1, PAD), const2),                 # b0
            pl.BlockSpec((PAD, PAD), const2),               # w1
            pl.BlockSpec((1, PAD), const2),                 # b1
            pl.BlockSpec((PAD, PAD), const2),               # w2
            pl.BlockSpec((1, PAD), const2),                 # b2
        ],
        out_specs=pl.BlockSpec((tile_b, PAD), lambda i: (i, 0)),  # lane-dense out
        compiler_params=pltpu.CompilerParams(
            dimension_semantics=("parallel",),  # batch axis -> both TCs on v7x
        ),
    )(x, w0, b0, w1, b1, w2, b2)

    return out_padded[:B, :out_dim]


def init_params(key):
    """Deterministic init mimicking torch.nn.Linear (U(-1/sqrt(in), 1/sqrt(in)))."""
    def linear(k, fan_in, fan_out):
        kw, kb = jax.random.split(k)
        bound = 1.0 / jnp.sqrt(fan_in)
        # stored as (in, out) so the kernel computes x @ W
        w = jax.random.uniform(kw, (fan_in, fan_out), jnp.float32, -bound, bound)
        b = jax.random.uniform(kb, (1, fan_out), jnp.float32, -bound, bound)
        return w, b

    k0, k1, k2 = jax.random.split(key, 3)
    w0, b0 = linear(k0, 64, 20)
    w1, b1 = linear(k1, 20, 40)
    w2, b2 = linear(k2, 40, 64)
    return {"w0": w0, "b0": b0, "w1": w1, "b1": b1, "w2": w2, "b2": b2}


def mlp_reference(x, p):
    v1 = jnp.tanh(x @ p["w0"] + p["b0"])
    v2 = jnp.tanh(v1 @ p["w1"] + p["b1"])
    v3 = jnp.tanh(v2 @ p["w2"] + p["b2"])
    return v3


if __name__ == "__main__":
    key = jax.random.PRNGKey(0)
    kx, kp, kb = jax.random.split(key, 3)
    params = init_params(kp)

    # Spec-sized input: torch.randn(1, 64)
    x1 = jax.random.normal(kx, (1, 64), jnp.float32)
    out1 = jax.block_until_ready(mlp_forward(x1, params))
    ref1 = mlp_reference(x1, params)
    assert out1.shape == (1, 64), out1.shape
    # bf16 MXU inputs with f32 accumulation -> loosened tolerance vs f32 ref
    assert jnp.allclose(out1, ref1, atol=2e-2, rtol=0.0), float(
        jnp.max(jnp.abs(out1 - ref1)))

    # Larger batch: exercises the grid (3 steps), batch padding (300 % 128 != 0)
    # and resident-weight BlockSpecs.
    xb = jax.random.normal(kb, (300, 64), jnp.float32)
    outb = jax.block_until_ready(mlp_forward(xb, params, tile_b=128))
    refb = mlp_reference(xb, params)
    assert outb.shape == (300, 64), outb.shape
    assert jnp.allclose(outb, refb, atol=2e-2, rtol=0.0), float(
        jnp.max(jnp.abs(outb - refb)))

    print("KERNEL_OK")
</pallas_src>

<mosaic_0001>
module attributes {stable_mosaic.version = 11 : i64} {
  func.func @mlp_kernel(%arg0: i32, %arg1: memref<8x64xf32, #tpu.memory_space<vmem>>, %arg2: memref<64x128xbf16, #tpu.memory_space<vmem>>, %arg3: memref<1x128xf32, #tpu.memory_space<vmem>>, %arg4: memref<128x128xbf16, #tpu.memory_space<vmem>>, %arg5: memref<1x128xf32, #tpu.memory_space<vmem>>, %arg6: memref<128x128xbf16, #tpu.memory_space<vmem>>, %arg7: memref<1x128xf32, #tpu.memory_space<vmem>>, %arg8: memref<8x128xf32, #tpu.memory_space<vmem>>) attributes {dimension_semantics = [#tpu.dimension_semantics<parallel>], iteration_bounds = array<i64: 1>, scalar_prefetch = 0 : i64, scratch_operands = 0 : i64, tpu.core_type = #tpu.core_type<tc>, window_params = [{transform_indices = @transform_0, window_bounds = array<i64: 8, 64>}, {pipeline_mode = #tpu.pipeline_mode<synchronous>, transform_indices = @transform_1, window_bounds = array<i64: 64, 128>}, {pipeline_mode = #tpu.pipeline_mode<synchronous>, transform_indices = @transform_2, window_bounds = array<i64: 1, 128>}, {pipeline_mode = #tpu.pipeline_mode<synchronous>, transform_indices = @transform_3, window_bounds = array<i64: 128, 128>}, {pipeline_mode = #tpu.pipeline_mode<synchronous>, transform_indices = @transform_4, window_bounds = array<i64: 1, 128>}, {pipeline_mode = #tpu.pipeline_mode<synchronous>, transform_indices = @transform_5, window_bounds = array<i64: 128, 128>}, {pipeline_mode = #tpu.pipeline_mode<synchronous>, transform_indices = @transform_6, window_bounds = array<i64: 1, 128>}, {transform_indices = @transform_7, window_bounds = array<i64: 8, 128>}]} {
    %c0 = arith.constant 0 : index
    %c0_0 = arith.constant 0 : index
    %0 = vector.load %arg1[%c0, %c0_0] : memref<8x64xf32, #tpu.memory_space<vmem>>, vector<8x64xf32>
    %1 = arith.truncf %0 : vector<8x64xf32> to vector<8x64xbf16>
    %c0_1 = arith.constant 0 : index
    %c0_2 = arith.constant 0 : index
    %2 = vector.load %arg2[%c0_1, %c0_2] : memref<64x128xbf16, #tpu.memory_space<vmem>>, vector<64x128xbf16>
    %cst = arith.constant dense<0.000000e+00> : vector<8x128xf32>
    %3 = tpu.matmul %1, %2, %cst {dimension_numbers = #tpu.dot_dimension_numbers<[1], [0], [0], [1], [0, 0, 1, 1], [], []>} : vector<8x64xbf16>, vector<64x128xbf16>, vector<8x128xf32> -> vector<8x128xf32>
    %c0_3 = arith.constant 0 : index
    %c0_4 = arith.constant 0 : index
    %4 = vector.load %arg3[%c0_3, %c0_4] : memref<1x128xf32, #tpu.memory_space<vmem>>, vector<1x128xf32>
    %5 = vector.broadcast %4 : vector<1x128xf32> to vector<8x128xf32>
    %6 = arith.addf %3, %5 : vector<8x128xf32>
    %7 = math.tanh %6 : vector<8x128xf32>
    %8 = arith.truncf %7 : vector<8x128xf32> to vector<8x128xbf16>
    %c0_5 = arith.constant 0 : index
    %c0_6 = arith.constant 0 : index
    %9 = vector.load %arg4[%c0_5, %c0_6] : memref<128x128xbf16, #tpu.memory_space<vmem>>, vector<128x128xbf16>
    %cst_7 = arith.constant dense<0.000000e+00> : vector<8x128xf32>
    %10 = tpu.matmul %8, %9, %cst_7 {dimension_numbers = #tpu.dot_dimension_numbers<[1], [0], [0], [1], [0, 0, 1, 1], [], []>} : vector<8x128xbf16>, vector<128x128xbf16>, vector<8x128xf32> -> vector<8x128xf32>
    %c0_8 = arith.constant 0 : index
    %c0_9 = arith.constant 0 : index
    %11 = vector.load %arg5[%c0_8, %c0_9] : memref<1x128xf32, #tpu.memory_space<vmem>>, vector<1x128xf32>
    %12 = vector.broadcast %11 : vector<1x128xf32> to vector<8x128xf32>
    %13 = arith.addf %10, %12 : vector<8x128xf32>
    %14 = math.tanh %13 : vector<8x128xf32>
    %15 = arith.truncf %14 : vector<8x128xf32> to vector<8x128xbf16>
    %c0_10 = arith.constant 0 : index
    %c0_11 = arith.constant 0 : index
    %16 = vector.load %arg6[%c0_10, %c0_11] : memref<128x128xbf16, #tpu.memory_space<vmem>>, vector<128x128xbf16>
    %cst_12 = arith.constant dense<0.000000e+00> : vector<8x128xf32>
    %17 = tpu.matmul %15, %16, %cst_12 {dimension_numbers = #tpu.dot_dimension_numbers<[1], [0], [0], [1], [0, 0, 1, 1], [], []>} : vector<8x128xbf16>, vector<128x128xbf16>, vector<8x128xf32> -> vector<8x128xf32>
    %c0_13 = arith.constant 0 : index
    %c0_14 = arith.constant 0 : index
    %18 = vector.load %arg7[%c0_13, %c0_14] : memref<1x128xf32, #tpu.memory_space<vmem>>, vector<1x128xf32>
    %19 = vector.broadcast %18 : vector<1x128xf32> to vector<8x128xf32>
    %20 = arith.addf %17, %19 : vector<8x128xf32>
    %21 = math.tanh %20 : vector<8x128xf32>
    %c0_15 = arith.constant 0 : index
    %c0_16 = arith.constant 0 : index
    %22 = vector.load %arg8[%c0_15, %c0_16] : memref<8x128xf32, #tpu.memory_space<vmem>>, vector<8x128xf32>
    tpu.vector_store %arg8[%c0_15, %c0_16], %21 {strides = array<i32>} : memref<8x128xf32, #tpu.memory_space<vmem>>, vector<8x128xf32>,
    return
  }
  func.func @transform_0(%arg0: i32) -> (i32, i32) {
    %c0_i32 = arith.constant 0 : i32
    %c0_i32_0 = arith.constant 0 : i32
    return %arg0, %c0_i32 : i32, i32
  }
  func.func @transform_1(%arg0: i32) -> (i32, i32) {
    %c0_i32 = arith.constant 0 : i32
    %c0_i32_0 = arith.constant 0 : i32
    %c0_i32_1 = arith.constant 0 : i32
    return %c0_i32, %c0_i32_0 : i32, i32
  }
  func.func @transform_2(%arg0: i32) -> (i32, i32) {
    %c0_i32 = arith.constant 0 : i32
    %c0_i32_0 = arith.constant 0 : i32
    %c0_i32_1 = arith.constant 0 : i32
    return %c0_i32, %c0_i32_0 : i32, i32
  }
  func.func @transform_3(%arg0: i32) -> (i32, i32) {
    %c0_i32 = arith.constant 0 : i32
    %c0_i32_0 = arith.constant 0 : i32
    %c0_i32_1 = arith.constant 0 : i32
    return %c0_i32, %c0_i32_0 : i32, i32
  }
  func.func @transform_4(%arg0: i32) -> (i32, i32) {
    %c0_i32 = arith.constant 0 : i32
    %c0_i32_0 = arith.constant 0 : i32
    %c0_i32_1 = arith.constant 0 : i32
    return %c0_i32, %c0_i32_0 : i32, i32
  }
  func.func @transform_5(%arg0: i32) -> (i32, i32) {
    %c0_i32 = arith.constant 0 : i32
    %c0_i32_0 = arith.constant 0 : i32
    %c0_i32_1 = arith.constant 0 : i32
    return %c0_i32, %c0_i32_0 : i32, i32
  }
  func.func @transform_6(%arg0: i32) -> (i32, i32) {
    %c0_i32 = arith.constant 0 : i32
    %c0_i32_0 = arith.constant 0 : i32
    %c0_i32_1 = arith.constant 0 : i32
    return %c0_i32, %c0_i32_0 : i32, i32
  }
  func.func @transform_7(%arg0: i32) -> (i32, i32) {
    %c0_i32 = arith.constant 0 : i32
    %c0_i32_0 = arith.constant 0 : i32
    return %arg0, %c0_i32 : i32, i32
  }
}

</mosaic_0001>

<bundles_post_ra>
// kernel: tpu_custom_call.1
= control target key start
LH: loop header
LB: loop body
LE: loop exit
PB: predicated region body
PF: predicated region fallthrough
CT: control target
= control target key end

     0   :  { %12 = vsyncpa [#allocation3], 0  ;;  %s816_s0 = inlined_call_operand.hbm [shape: f32[8,64], index: 0, kind: input, shape index: {}]   ;;  %s817_s1 = inlined_call_operand.hbm [shape: bf16[64,128], index: 1, kind: input, shape index: {}]   ;;  %s818_s2 = inlined_call_operand.vmem [shape: f32[1,128], index: 2, kind: input, shape index: {}]   ;;  %s819_s3 = inlined_call_operand.hbm [shape: bf16[128,128], index: 3, kind: input, shape index: {}]   ;;  %s820_s4 = inlined_call_operand.vmem [shape: f32[1,128], index: 4, kind: input, shape index: {}]   ;;  %s821_s5 = inlined_call_operand.hbm [shape: bf16[128,128], index: 5, kind: input, shape index: {}]   ;;  %s822_s6 = inlined_call_operand.vmem [shape: f32[1,128], index: 6, kind: input, shape index: {}]   ;;  %s823_s7 = inlined_call_operand.hbm [shape: f32[8,128], index: 7, kind: output, shape index: {}]  }
   0x1   :  { %13 = vsyncpa [#allocation6], 0 }
   0x2   :  { %14 = vsyncpa [#allocation9], 0 }
   0x3   :  { %15 = vsyncpa [#allocation4], 0  ;;  %s663_s24 = smov [#allocation5]   ;;  %s545_s28 = scalar_lea.hbm %s817_s1, 512 }
   0x4   :  { %s31_s25 = sshll.u32 %s663_s24, 4  ;;  %p546_p0 = scmp.ne.s32.totalorder %s817_s1, %s545_s28  ;;  %s32_s25 = int_to_ptr.vmem [resolvable:$true] %s31_s25 }
   0x5   :  { %p549_p1 = scmp.lt.u32.totalorder %s545_s28, %s817_s1 }
   0x7   :  { %p551_p2 = pnand %p549_p1, %p546_p0 }
   0x9   :  { %554 = shalt.err (!%p551_p2)
}
   0xa   :  { %s555_s10 = scalar_lea.vmem %s32_s25, 512  ;;  %p560_p4 = scmp.lt.s32.totalorder %s32_s25, %s32_s25 }
   0xb   :  { %p556_p3 = scmp.ne.s32.totalorder %s32_s25, %s555_s10  ;;  %p561_p5 = scmp.lt.s32.totalorder %s555_s10, %s555_s10 }
   0xd   :  { %p562_p6 = por %p561_p5, %p560_p4 }
   0xf   :  { %p563_p7 = pnand %p562_p6, %p556_p3 }
  0x11   :  { %566 = shalt.err (!%p563_p7)
}
  0x12   :  { %s664_s11 = smov 64   ;;  %s665_s12 = smov 4  }
  0x13   :  { %37 = dma.hbm_to_vmem [thread:$0]  %s817_s1, 512, %s32_s25, [#allocation6], %s664_s11, %s664_s11, %s665_s12  }
  0x14   :  { %s666_s15 = smov [#allocation2]   ;;  %s667_s17 = smov [#allocation7]  }
  0x15   :  { %s22_s16 = sshll.u32 %s666_s15, 4  ;;  %s45_s18 = sshll.u32 %s667_s17, 4  ;;  %s23_s16 = int_to_ptr.vmem [resolvable:$true] %s22_s16  ;;  %s46_s18 = int_to_ptr.vmem [resolvable:$true] %s45_s18 }
  0x16   :  { %s567_s21 = scalar_lea.hbm %s816_s0, 128 }
  0x17   :  { %p568_p8 = scmp.ne.s32.totalorder %s816_s0, %s567_s21  ;;  %p571_p9 = scmp.lt.u32.totalorder %s567_s21, %s816_s0 }
  0x19   :  { %p573_p10 = pnand %p571_p9, %p568_p8 }
  0x1b   :  { %576 = shalt.err (!%p573_p10)
}
  0x1c   :  { %s577_s1 = scalar_lea.vmem %s23_s16, 128  ;;  %p582_p12 = scmp.lt.s32.totalorder %s23_s16, %s23_s16 }
  0x1d   :  { %p578_p11 = scmp.ne.s32.totalorder %s23_s16, %s577_s1  ;;  %p583_p13 = scmp.lt.s32.totalorder %s577_s1, %s577_s1 }
  0x1f   :  { %p584_p0 = por %p583_p13, %p582_p12 }
  0x21   :  { %p585_p1 = pnand %p584_p0, %p578_p11 }
  0x23   :  { %588 = shalt.err (!%p585_p1)
}
  0x24   :  { %25 = dma.hbm_to_vmem [thread:$0]  %s816_s0, 128, %s23_s16, [#allocation3]  }
  0x25   :  { %s589_s30 = scalar_lea.hbm %s819_s3, 1024 }
  0x26   :  { %p590_p2 = scmp.ne.s32.totalorder %s819_s3, %s589_s30  ;;  %p593_p3 = scmp.lt.u32.totalorder %s589_s30, %s819_s3 }
  0x28   :  { %p595_p4 = pnand %p593_p3, %p590_p2 }
  0x2a   :  { %598 = shalt.err (!%p595_p4)
}
  0x2b   :  { %s599_s14 = scalar_lea.vmem %s46_s18, 1024  ;;  %p604_p6 = scmp.lt.s32.totalorder %s46_s18, %s46_s18 }
  0x2c   :  { %p600_p5 = scmp.ne.s32.totalorder %s46_s18, %s599_s14  ;;  %p605_p7 = scmp.lt.s32.totalorder %s599_s14, %s599_s14 }
  0x2e   :  { %p606_p8 = por %p605_p7, %p604_p6 }
  0x30   :  { %p607_p9 = pnand %p606_p8, %p600_p5 }
  0x32   :  { %610 = shalt.err (!%p607_p9)
}
  0x33   :  { %51 = dma.hbm_to_vmem [thread:$0]  %s819_s3, 1024, %s46_s18, [#allocation6], %s664_s11, %s664_s11, %s665_s12  }
  0x34   :  { %s668_s16 = smov [#allocation8]   ;;  %s611_s21 = scalar_lea.hbm %s821_s5, 1024 }
  0x35   :  { %s59_s17 = sshll.u32 %s668_s16, 4  ;;  %p612_p10 = scmp.ne.s32.totalorder %s821_s5, %s611_s21  ;;  %s60_s17 = int_to_ptr.vmem [resolvable:$true] %s59_s17 }
  0x36   :  { %p615_p11 = scmp.lt.u32.totalorder %s611_s21, %s821_s5 }
  0x38   :  { %p617_p12 = pnand %p615_p11, %p612_p10 }
  0x3a   :  { %620 = shalt.err (!%p617_p12)
}
  0x3b   :  { %s621_s1 = scalar_lea.vmem %s60_s17, 1024  ;;  %p626_p0 = scmp.lt.s32.totalorder %s60_s17, %s60_s17 }
  0x3c   :  { %p622_p13 = scmp.ne.s32.totalorder %s60_s17, %s621_s1  ;;  %p627_p1 = scmp.lt.s32.totalorder %s621_s1, %s621_s1 }
  0x3e   :  { %p628_p2 = por %p627_p1, %p626_p0 }
  0x40   :  { %p629_p3 = pnand %p628_p2, %p622_p13 }
  0x42   :  { %632 = shalt.err (!%p629_p3)
}
  0x43   :  { %65 = dma.hbm_to_vmem [thread:$0]  %s821_s5, 1024, %s60_s17, [#allocation9], %s664_s11, %s664_s11, %s665_s12  }
  0x44   :  { %655 = dma.done.wait [#allocation3], 128  }
  0x45   :  { %656 = vsyncadd [#allocation3], 4294967168 }
  0x46   :  { %657 = dma.done.wait [#allocation6], 1536  }
  0x47   :  { %658 = vsyncadd [#allocation6], 4294965760 }
  0x48   :  { %659 = dma.done.wait [#allocation9], 1024  }
  0x49   :  { %660 = vsyncadd [#allocation9], 4294966272  ;;  %v669_v0 = vmov 0.0   ;;  %vm670_vm0 = vmmov 0   ;;  %v519_v1 = vld [vmem:[#allocation5] sm:$0xff]   ;;  %v520_v2 = vld [vmem:[#allocation5 + $0x8] sm:$0xff]  }
  0x4a   :  { %458 = vmatprep.subr.bf16.mxu0 %v669_v0  ;;  %466 = vmatprep.mubr.msk.bf16.mxu0 %vm670_vm0, %v669_v0  ;;  %v523_v3 = vld [vmem:[#allocation7] sm:$0xff]   ;;  %v521_v4 = vld [vmem:[#allocation5 + $0x10] sm:$0xff]   ;;  %v524_v5 = vld [vmem:[#allocation7 + $0x8] sm:$0xff]   ;;  %vm122_vm1 = vcmask 523264  }
  0x4b   :  { %470 = vmatprep.subr.bf16.mxu1 %v669_v0  ;;  %486 = vmatprep.mubr.msk.bf16.mxu1 %vm670_vm0, %v669_v0  ;;  %v522_v6 = vld [vmem:[#allocation5 + $0x18] sm:$0xff]   ;;  %v525_v8 = vld [vmem:[#allocation7 + $0x10] sm:$0xff]   ;;  %v527_v11 = vld [vmem:[#allocation7 + $0x20] sm:$0xff]  }
  0x4c   :  { %459 = vmatpush3.bf16.msra.mxu0 %v519_v1  ;;  %471 = vmatpush3.bf16.msra.mxu1 %v523_v3  ;;  %v81_v7 = vld [vmem:[#allocation2] sm:$0xff]  ;;  %v528_v12 = vld [vmem:[#allocation7 + $0x28] sm:$0xff]   ;;  %v529_v13 = vld [vmem:[#allocation7 + $0x30] sm:$0xff]  }
  0x4d   :  { %460 = vmatprep.subr.bf16.mxu0 %v669_v0  ;;  %472 = vmatprep.subr.bf16.mxu1 %v669_v0  ;;  %v82_v9 = vpack.c.bf16 %v81_v7, %v81_v7  ;;  %v526_v10 = vld [vmem:[#allocation7 + $0x18] sm:$0xff]   ;;  %v531_v15 = vld [vmem:[#allocation8] sm:$0xff]   ;;  %v532_v16 = vld [vmem:[#allocation8 + $0x8] sm:$0xff]  }
  0x4e   :  { %v530_v14 = vld [vmem:[#allocation7 + $0x38] sm:$0xff]   ;;  %v533_v17 = vld [vmem:[#allocation8 + $0x10] sm:$0xff]   ;;  %v535_v27 = vld [vmem:[#allocation8 + $0x20] sm:$0xff]  }
  0x4f   :  { %v534_v18 = vld [vmem:[#allocation8 + $0x18] sm:$0xff]   ;;  %v536_v28 = vld [vmem:[#allocation8 + $0x28] sm:$0xff]   ;;  %v537_v29 = vld [vmem:[#allocation8 + $0x30] sm:$0xff]  }
  0x50   :  { %461 = vmatpush3.bf16.msra.mxu0 %v520_v2  ;;  %473 = vmatpush3.bf16.msra.mxu1 %v524_v5  ;;  %v411_v19 = vld [vmem:[%s818_s2] ss:$0 sm:$0xff] }
  0x51   :  { %462 = vmatprep.subr.bf16.mxu0 %v669_v0  ;;  %474 = vmatprep.subr.bf16.mxu1 %v669_v0  ;;  %v538_v30 = vld [vmem:[#allocation8 + $0x38] sm:$0xff]  }
  0x52   :  { %v417_v31 = vld [vmem:[%s820_s4] ss:$0 sm:$0xff]  ;;  %s671_s4 = smov [#allocation10]  }
  0x53   :  { %v426_v39 = vld [vmem:[%s822_s6] ss:$0 sm:$0xff]  ;;  %s400_s28 = sshll.u32 %s671_s4, 4  ;;  %s401_s28 = int_to_ptr.vmem [resolvable:$true] %s400_s28 }
  0x54   :  { %463 = vmatpush3.bf16.msra.mxu0 %v521_v4  ;;  %475 = vmatpush3.bf16.msra.mxu1 %v525_v8  ;;  %s633_s29 = scalar_lea.vmem %s401_s28, 128  ;;  %p638_p5 = scmp.lt.s32.totalorder %s401_s28, %s401_s28 }
  0x55   :  { %464 = vmatprep.subr.bf16.mxu0 %v669_v0  ;;  %476 = vmatprep.subr.bf16.mxu1 %v669_v0  ;;  %p634_p4 = scmp.ne.s32.totalorder %s401_s28, %s633_s29  ;;  %p639_p6 = scmp.lt.s32.totalorder %s633_s29, %s633_s29 }
  0x57   :  { %p640_p7 = por %p639_p6, %p638_p5 }
  0x58   :  { %465 = vmatpush3.bf16.msra.mxu0 %v522_v6  ;;  %477 = vmatpush3.bf16.msra.mxu1 %v526_v10 }
  0x59   :  { %490 = vmatprep.subr.bf16.mxu0 %v669_v0  ;;  %478 = vmatprep.subr.bf16.mxu1 %v669_v0  ;;  %p641_p8 = pnand %p640_p7, %p634_p4 }
  0x5b   :  { %467 = vmatmul.mubr.msk.bf16.vlgmr.msra.gmra.mrb[0].mxu0 %vm122_vm1, %v82_v9 }
  0x5c   :  { %506 = vmatprep.mubr.msk.bf16.mxu0 %vm670_vm0, %v669_v0  ;;  %479 = vmatpush3.bf16.msra.mxu1 %v527_v11 }
  0x5d   :  { %480 = vmatprep.subr.bf16.mxu1 %v669_v0  ;;  %491 = vmatpush3.bf16.msra.mxu0 %v531_v15 }
  0x5e   :  { %492 = vmatprep.subr.bf16.mxu0 %v669_v0 }
  0x60   :  { %481 = vmatpush3.bf16.msra.mxu1 %v528_v12 }
  0x61   :  { %482 = vmatprep.subr.bf16.mxu1 %v669_v0  ;;  %493 = vmatpush3.bf16.msra.mxu0 %v532_v16 }
  0x62   :  { %494 = vmatprep.subr.bf16.mxu0 %v669_v0 }
  0x64   :  { %483 = vmatpush3.bf16.msra.mxu1 %v529_v13 }
  0x65   :  { %484 = vmatprep.subr.bf16.mxu1 %v669_v0  ;;  %495 = vmatpush3.bf16.msra.mxu0 %v533_v17 }
  0x66   :  { %496 = vmatprep.subr.bf16.mxu0 %v669_v0 }
  0x68   :  { %485 = vmatpush3.bf16.msra.mxu1 %v530_v14 }
  0x69   :  { %497 = vmatpush3.bf16.msra.mxu0 %v534_v18 }
  0x6a   :  { %498 = vmatprep.subr.bf16.mxu0 %v669_v0 }
  0x6d   :  { %499 = vmatpush3.bf16.msra.mxu0 %v535_v27 }
  0x6e   :  { %500 = vmatprep.subr.bf16.mxu0 %v669_v0 }
  0x71   :  { %501 = vmatpush3.bf16.msra.mxu0 %v536_v28 }
  0x72   :  { %502 = vmatprep.subr.bf16.mxu0 %v669_v0 }
  0x75   :  { %503 = vmatpush3.bf16.msra.mxu0 %v537_v29 }
  0x76   :  { %504 = vmatprep.subr.bf16.mxu0 %v669_v0 }
  0x79   :  { %505 = vmatpush3.bf16.msra.mxu0 %v538_v30 }
 0x12e   :  { %v160_v20 = vpop.f32.mrb[0].mxu0 }
 0x12f   :  { %v161_v21 = vadd.f32 %v411_v19, %v160_v20  ;;  %v468_v22 = vpop.f32.mrb[1].mxu0 }
 0x130   :  { %v163_v23 = vpop.f32.mrb[2].mxu0 }
 0x131   :  { %539 = vtanh.f32 %v161_v21  ;;  %v469_v24 = vpop.f32.mrb[3].mxu0 }
 0x13b   :  { %v540_v25 = vpop.eup %539 }
 0x13c   :  { %v167_v26 = vpack.c.bf16 %v540_v25, %v540_v25 }
 0x13e   :  { %487 = vmatmul.mubr.bf16.vlgmr.msra.gmra.mrb[0].mxu1 %v167_v26 }
 0x211   :  { %v273_v32 = vpop.f32.mrb[0].mxu1 }
 0x212   :  { %v274_v33 = vadd.f32 %v417_v31, %v273_v32  ;;  %v488_v34 = vpop.f32.mrb[1].mxu1 }
 0x213   :  { %v276_v35 = vpop.f32.mrb[2].mxu1 }
 0x214   :  { %541 = vtanh.f32 %v274_v33  ;;  %v489_v36 = vpop.f32.mrb[3].mxu1 }
 0x21e   :  { %v542_v37 = vpop.eup %541 }
 0x21f   :  { %v280_v38 = vpack.c.bf16 %v542_v37, %v542_v37 }
 0x221   :  { %507 = vmatmul.mubr.bf16.vlgmr.msra.gmra.mrb[4].mxu0 %v280_v38 }
 0x2f4   :  { %v386_v40 = vpop.f32.mrb[4].mxu0 }
 0x2f5   :  { %v387_v41 = vadd.f32 %v426_v39, %v386_v40  ;;  %v508_v42 = vpop.f32.mrb[5].mxu0 }
 0x2f6   :  { %v389_v43 = vpop.f32.mrb[6].mxu0 }
 0x2f7   :  { %543 = vtanh.f32 %v387_v41  ;;  %v509_v44 = vpop.f32.mrb[7].mxu0 }
 0x301   :  { %v544_v45 = vpop.eup %543 }
 0x302   :  { %393 = vst [vmem:[#allocation10] sm:$0xff] %v544_v45 }
 0x303   :  { %644 = shalt.err (!%p641_p8)
}
 0x304   :  { %s645_s8 = scalar_lea.hbm %s823_s7, 128 }
 0x305   :  { %p646_p9 = scmp.ne.s32.totalorder %s823_s7, %s645_s8  ;;  %p649_p10 = scmp.lt.u32.totalorder %s645_s8, %s823_s7 }
 0x307   :  { %p651_p11 = pnand %p649_p10, %p646_p9 }
 0x309   :  { %654 = shalt.err (!%p651_p11)
}
 0x30a   :  { %403 = dma.vmem_to_hbm [thread:$0]  %s401_s28, 128, %s823_s7, [#allocation4]  }
 0x30b   :  { %661 = dma.done.wait [#allocation4], 128  }
 0x30c   :  { %662 = vsyncadd [#allocation4], 4294967168 }
 0x30d   :  { %407 = vsyncpa [#allocation3], 1 }
 0x30e   :  { %408 = vsyncpa [#allocation6], 1 }
 0x30f   :  { %409 = vsyncpa [#allocation9], 1 }
 0x310   :  { %410 = vsyncpa [#allocation4], 1 }

</bundles_post_ra>
